<compile_context>
chip_gen: v7x
topology: tpu7x:2x2x1
jax: 0.10.0
libtpu: 0.0.40
codegen_flags: <defaults>
</compile_context>

<pallas_src>
import functools

import jax
import jax.numpy as jnp
from jax.experimental import pallas as pl
from jax.experimental.pallas import tpu as pltpu


def _aug_zero_pad_kernel(x_ref, o_ref, *, split):
    # x_ref: (bt, C*H*W)   VMEM tile, native input dtype
    # o_ref: (bt, AUG*H*W) VMEM tile, float32
    bt, out_w = o_ref.shape
    # Copy the input channels (single write; the f32 cast is VPU filler).
    o_ref[:, :split] = x_ref[...].astype(o_ref.dtype)
    # Zero only the padding channels (no double-write of the copied region).
    if split < out_w:
        o_ref[:, split:] = jnp.zeros((bt, out_w - split), dtype=o_ref.dtype)


def _chip_config():
    """Returns (target block bytes [in+out combined], tensorcores per chip)."""
    try:
        kind = jax.devices()[0].device_kind.lower()
    except Exception:
        kind = ""
    if "v7" in kind:
        # 64 MiB VMEM, ~3.2 TB/s HBM, 2 TCs: big blocks + 2-way grid split,
        # but keep 2x(block) inside the 32 MiB default scoped VMEM.
        return 12 << 20, 2
    if "v6" in kind:
        # Single TC, 128 MiB VMEM (32 MiB default scoped): go big.
        return 14 << 20, 1
    # v5e (and conservative default): 16 MiB default scoped VMEM, single TC.
    return 6 << 20, 1


def _sublane_multiple(dtype):
    """Sublane packing requirement for a given dtype (8 f32, 16 bf16, 32 int8)."""
    itemsize = max(1, jnp.dtype(dtype).itemsize)
    return max(8, 8 * (4 // itemsize))


def _pick_batch_tile(B, bytes_per_batch, sub, target_bytes, num_cores):
    """Largest batch tile that (a) divides B, (b) keeps sublanes packed
    (multiple of `sub`, or == B), (c) fits under target_bytes, and (d) leaves
    grid >= 2 when there are multiple TensorCores and the problem is big enough
    to be worth splitting."""
    want_parallel = num_cores > 1 and B * bytes_per_batch >= (4 << 20)
    cands = [
        bt for bt in range(sub, B + 1, sub)
        if B % bt == 0
        and bt * bytes_per_batch <= target_bytes
        and (not want_parallel or B // bt >= 2)
    ]
    if cands:
        return max(cands)
    # Fallback 1: whole batch in one block (block dim == full array dim is legal).
    if B * bytes_per_batch <= target_bytes:
        return B
    # Fallback 2: any divisor that fits (sublane padding; still correct).
    cands = [bt for bt in range(1, B + 1)
             if B % bt == 0 and bt * bytes_per_batch <= target_bytes]
    return max(cands) if cands else 1


def anode_initial_velocity(x0, aug):
    """JAX/Pallas equivalent of the PyTorch module's forward.

    x0:  (B, C, H, W) array (any numeric dtype); C is expected to be 3.
    aug: int >= C, number of augmented channels.
    Returns: (B, 1, AUG, H, W) float32 array.
    """
    B, C, H, W = x0.shape
    assert aug >= C, "aug must be >= number of input channels"
    HW = H * W
    in_w = C * HW          # lane extent of the input row
    out_w = aug * HW       # lane extent of the output row

    # Lane-dense layout: fold (C, H, W) -> C*H*W (row-major, so the first C*HW
    # output lanes are exactly channels 0..C-1). Reshape is free (contiguous).
    x_flat = x0.reshape(B, in_w)

    in_bytes = jnp.dtype(x0.dtype).itemsize
    bytes_per_b = HW * (C * in_bytes + aug * 4)   # in + out per batch element
    target_bytes, num_cores = _chip_config()
    sub = _sublane_multiple(x0.dtype)
    bt = _pick_batch_tile(B, bytes_per_b, sub, target_bytes, num_cores)

    kernel = functools.partial(_aug_zero_pad_kernel, split=in_w)

    out = pl.pallas_call(
        kernel,
        out_shape=jax.ShapeDtypeStruct((B, out_w), jnp.float32),
        grid_spec=pltpu.PrefetchScalarGridSpec(
            num_scalar_prefetch=0,
            grid=(B // bt,),
            in_specs=[
                # Last dim == full array dim -> legal; bt is sublane-packed or == B.
                pl.BlockSpec((bt, in_w), lambda b: (b, 0)),
            ],
            out_specs=pl.BlockSpec((bt, out_w), lambda b: (b, 0)),
        ),
        compiler_params=pltpu.CompilerParams(
            dimension_semantics=("parallel",),
        ),
        cost_estimate=pl.CostEstimate(
            flops=0,
            transcendentals=0,
            bytes_accessed=B * bytes_per_b,
        ),
    )(x_flat)

    # (B, AUG*H*W) -> (B, 1, AUG, H, W)   (free reshape)
    return out.reshape(B, 1, aug, H, W)


if __name__ == "__main__":
    # C must be 3 because of the out[:, :, :3] += x0 write in the reference.
    B, C, H, W = 2, 3, 16, 16
    AUG = 5

    key = jax.random.PRNGKey(0)
    x0 = jax.random.normal(key, (B, C, H, W), dtype=jnp.float32)

    out = jax.block_until_ready(anode_initial_velocity(x0, AUG))

    # Reference check in plain JAX (mirrors the PyTorch forward).
    ref = jnp.zeros((B, 1, AUG, H, W), dtype=jnp.float32)
    ref = ref.at[:, :, :C].add(x0.reshape(B, 1, C, H, W).astype(jnp.float32))
    assert out.shape == (B, 1, AUG, H, W)
    assert out.dtype == jnp.float32
    assert jnp.allclose(out, ref), "mismatch vs reference"

    print("KERNEL_OK")
</pallas_src>

<mosaic_0001>
module attributes {stable_mosaic.version = 11 : i64} {
  func.func @_aug_zero_pad_kernel(%arg0: i32, %arg1: memref<2x768xf32, #tpu.memory_space<vmem>>, %arg2: memref<2x1280xf32, #tpu.memory_space<vmem>>) attributes {dimension_semantics = [#tpu.dimension_semantics<parallel>], iteration_bounds = array<i64: 1>, scalar_prefetch = 0 : i64, scratch_operands = 0 : i64, tpu.core_type = #tpu.core_type<tc>, window_params = [{transform_indices = @transform_0, window_bounds = array<i64: 2, 768>}, {transform_indices = @transform_1, window_bounds = array<i64: 2, 1280>}]} {
    %c0 = arith.constant 0 : index
    %c0_0 = arith.constant 0 : index
    %0 = vector.load %arg1[%c0, %c0_0] : memref<2x768xf32, #tpu.memory_space<vmem>>, vector<2x768xf32>
    %c0_1 = arith.constant 0 : index
    %c0_2 = arith.constant 0 : index
    %1 = vector.load %arg2[%c0_1, %c0_2] : memref<2x1280xf32, #tpu.memory_space<vmem>>, vector<2x768xf32>
    tpu.vector_store %arg2[%c0_1, %c0_2], %0 {strides = array<i32>} : memref<2x1280xf32, #tpu.memory_space<vmem>>, vector<2x768xf32>,
    %cst = arith.constant 0.000000e+00 : f32
    %2 = vector.broadcast %cst : f32 to vector<2x512xf32>
    %c0_3 = arith.constant 0 : index
    %c768 = arith.constant 768 : index
    %3 = vector.load %arg2[%c0_3, %c768] : memref<2x1280xf32, #tpu.memory_space<vmem>>, vector<2x512xf32>
    tpu.vector_store %arg2[%c0_3, %c768], %2 {strides = array<i32>} : memref<2x1280xf32, #tpu.memory_space<vmem>>, vector<2x512xf32>,
    return
  }
  func.func @transform_0(%arg0: i32) -> (i32, i32) {
    %c0_i32 = arith.constant 0 : i32
    %c0_i32_0 = arith.constant 0 : i32
    return %arg0, %c0_i32 : i32, i32
  }
  func.func @transform_1(%arg0: i32) -> (i32, i32) {
    %c0_i32 = arith.constant 0 : i32
    %c0_i32_0 = arith.constant 0 : i32
    return %arg0, %c0_i32 : i32, i32
  }
}

</mosaic_0001>

<bundles_post_ra>
// kernel: tpu_custom_call.1
= control target key start
LH: loop header
LB: loop body
LE: loop exit
PB: predicated region body
PF: predicated region fallthrough
CT: control target
= control target key end

     0   :  { %6 = vsyncpa [#allocation3], 0  ;;  %s129_s0 = inlined_call_operand.hbm [shape: f32[2,768], index: 0, kind: input, shape index: {}]   ;;  %s130_s1 = inlined_call_operand.hbm [shape: f32[2,1280], index: 1, kind: output, shape index: {}]  }
   0x1   :  { %7 = vsyncpa [#allocation4], 0  ;;  %s92_s6 = smov [#allocation2]   ;;  %s44_s10 = scalar_lea.hbm %s129_s0, 192 }
   0x2   :  { %s14_s7 = sshll.u32 %s92_s6, 4  ;;  %p45_p0 = scmp.ne.s32.totalorder %s129_s0, %s44_s10  ;;  %s15_s7 = int_to_ptr.vmem [resolvable:$true] %s14_s7 }
   0x3   :  { %p48_p1 = scmp.lt.u32.totalorder %s44_s10, %s129_s0 }
   0x5   :  { %p50_p2 = pnand %p48_p1, %p45_p0 }
   0x7   :  { %53 = shalt.err (!%p50_p2)
}
   0x8   :  { %s54_s15 = scalar_lea.vmem %s15_s7, 192  ;;  %p59_p4 = scmp.lt.s32.totalorder %s15_s7, %s15_s7 }
   0x9   :  { %p55_p3 = scmp.ne.s32.totalorder %s15_s7, %s54_s15  ;;  %p60_p5 = scmp.lt.s32.totalorder %s54_s15, %s54_s15 }
   0xb   :  { %p61_p6 = por %p60_p5, %p59_p4 }
   0xd   :  { %p62_p7 = pnand %p61_p6, %p55_p3 }
   0xf   :  { %65 = shalt.err (!%p62_p7)
}
  0x10   :  { %17 = dma.hbm_to_vmem [thread:$0]  %s129_s0, 192, %s15_s7, [#allocation3]  }
  0x11   :  { %88 = dma.done.wait [#allocation3], 192  }
  0x12   :  { %89 = vsyncadd [#allocation3], 4294967104  ;;  %v93_v0 = vmov 0.0   ;;  %s94_s18 = smov [#allocation5]   ;;  %v21_v1 = vld [vmem:[#allocation2] sm:$0xff] }
  0x13   :  { %25 = vst [vmem:[#allocation5 + $0xc] sm:$0xff] %v93_v0  ;;  %s32_s19 = sshll.u32 %s94_s18, 4  ;;  %v22_v2 = vld [vmem:[#allocation2 + $0x8] sm:$0xf]  ;;  %23 = vst [vmem:[#allocation5] sm:$0xff] %v21_v1  ;;  %s33_s19 = int_to_ptr.vmem [resolvable:$true] %s32_s19 }
  0x14   :  { %24 = vst [vmem:[#allocation5 + $0x8] sm:$0xf] %v22_v2  ;;  %s66_s20 = scalar_lea.vmem %s33_s19, 320  ;;  %p71_p9 = scmp.lt.s32.totalorder %s33_s19, %s33_s19 }
  0x15   :  { %p67_p8 = scmp.ne.s32.totalorder %s33_s19, %s66_s20  ;;  %p72_p10 = scmp.lt.s32.totalorder %s66_s20, %s66_s20 }
  0x17   :  { %p73_p11 = por %p72_p10, %p71_p9 }
  0x19   :  { %p74_p12 = pnand %p73_p11, %p67_p8 }
  0x1b   :  { %77 = shalt.err (!%p74_p12)
}
  0x1c   :  { %s78_s22 = scalar_lea.hbm %s130_s1, 320 }
  0x1d   :  { %p79_p13 = scmp.ne.s32.totalorder %s130_s1, %s78_s22  ;;  %p82_p0 = scmp.lt.u32.totalorder %s78_s22, %s130_s1 }
  0x1f   :  { %p84_p1 = pnand %p82_p0, %p79_p13 }
  0x21   :  { %87 = shalt.err (!%p84_p1)
}
  0x22   :  { %35 = dma.vmem_to_hbm [thread:$0]  %s33_s19, 320, %s130_s1, [#allocation4]  }
  0x23   :  { %90 = dma.done.wait [#allocation4], 320  }
  0x24   :  { %91 = vsyncadd [#allocation4], 4294966976 }
  0x25   :  { %39 = vsyncpa [#allocation3], 1 }
  0x26   :  { %40 = vsyncpa [#allocation4], 1 }

</bundles_post_ra>
